<compile_context>
chip_gen: v7x
topology: tpu7x:2x2x1
jax: 0.10.0
libtpu: 0.0.40
codegen_flags: <defaults>
</compile_context>

<pallas_src>
import jax
import jax.numpy as jnp
from jax.experimental import pallas as pl
from jax.experimental.pallas import tpu as pltpu


def _round_up(x, m):
    return pl.cdiv(x, m) * m


def _choose_edge_tile(E, H, itemsize):
    """Pick TE (multiple of 128) for the streamed (H, TE) edge tile."""
    e128 = _round_up(max(E, 1), 128)
    bytes_per_row = max(1, H * itemsize)
    # Target >= ~2 MiB streamed per grid step; cap a single buffer at ~8 MiB
    # (double-buffered -> <= 16 MiB, comfortable on every generation).
    target_rows = (2 * 1024 * 1024) // bytes_per_row
    cap_rows = (8 * 1024 * 1024) // bytes_per_row
    te = max(128, min(_round_up(target_rows, 128), (cap_rows // 128) * 128))
    # Never exceed the (128-padded) problem size.
    te = min(te, e128)
    # Keep >= 2 grid steps when possible so the "parallel" axis can use both
    # TensorCores on v7x / megacore sharding.
    if e128 >= 256:
        te = min(te, max(128, (e128 // 2 // 128) * 128))
    return max(128, (te // 128) * 128)


def _edge_score_kernel(g_ref, w2_ref, out_ref):
    # g_ref   : (H, TE) bf16  combined per-edge pre-activation (b1 folded in)
    # w2_ref  : (H, 1)  f32   resident second-layer weight column
    # out_ref : (1, TE) f32   lane-dense per-edge scores (before + b2)
    hidden = jnp.maximum(g_ref[...].astype(jnp.float32), 0.0)   # VPU relu (f32)
    weighted = hidden * w2_ref[...]                             # VPU multiply
    out_ref[...] = jnp.sum(weighted, axis=0, keepdims=True)     # XLU sublane reduce


def mlp_predictor_scores(h, src, dst, w1, b1, w2, b2):
    """Pallas equivalent of MLPPredictor.forward(g, h) -> edge scores (E,).

    h   : (N, H)  node features
    src : (E,)    edge source node ids
    dst : (E,)    edge destination node ids
    w1  : (H, 2H) torch Linear weight (out, in)
    b1  : (H,)
    w2  : (1, H)
    b2  : (1,)
    """
    h = jnp.asarray(h, jnp.float32)
    w1 = jnp.asarray(w1, jnp.float32)
    b1 = jnp.asarray(b1, jnp.float32)
    w2 = jnp.asarray(w2, jnp.float32)
    b2 = jnp.asarray(b2, jnp.float32)

    N, H = h.shape
    E = int(src.shape[0])

    # ---- per-node first-layer projection (once per node; E >> N typically).
    # Single (2H, H) @ (H, N) matmul fills the MXU better than two H-row ones.
    w1_stacked = jnp.concatenate([w1[:, :H], w1[:, H:]], axis=0)   # (2H, H)
    proj = w1_stacked @ h.T                                        # (2H, N)
    p_src_t = proj[:H] + b1[:, None]        # b1 folded in once per node
    p_dst_t = proj[H:]                      # (H, N)

    # ---- tile / pad the edge axis (pad the cheap index vectors, not slabs).
    TE = _choose_edge_tile(E, H, itemsize=2)          # bf16 streaming
    e_pad = _round_up(max(E, 1), TE)
    pad = e_pad - E
    src_i = jnp.asarray(src, jnp.int32)
    dst_i = jnp.asarray(dst, jnp.int32)
    if pad:
        src_i = jnp.pad(src_i, (0, pad))              # pad with valid node id 0
        dst_i = jnp.pad(dst_i, (0, pad))

    # ---- graph glue: ONE combined gathered slab, streamed in bf16.
    g = (jnp.take(p_src_t, src_i, axis=1)
         + jnp.take(p_dst_t, dst_i, axis=1)).astype(jnp.bfloat16)  # (H, e_pad)

    w2c = w2.reshape(1, H).T                                        # (H, 1) f32

    grid = (e_pad // TE,)

    out = pl.pallas_call(
        _edge_score_kernel,
        out_shape=jax.ShapeDtypeStruct((1, e_pad), jnp.float32),
        grid=grid,
        in_specs=[
            pl.BlockSpec((H, TE), lambda i: (0, i)),   # streamed bf16 edge tile
            pl.BlockSpec((H, 1), lambda i: (0, 0)),    # w2 column (resident)
        ],
        out_specs=pl.BlockSpec((1, TE), lambda i: (0, i)),
        compiler_params=pltpu.CompilerParams(
            dimension_semantics=("parallel",),
            vmem_limit_bytes=40 * 1024 * 1024,
        ),
    )(g, w2c)

    # squeeze(1) + second-layer bias; drop the pad tail.
    return out[0, :E] + b2[0]


def _reference(h, src, dst, w1, b1, w2, b2):
    h_cat = jnp.concatenate([h[src], h[dst]], axis=1)
    hid = jnp.maximum(h_cat @ w1.T + b1, 0.0)
    return (hid @ w2.T + b2)[:, 0]


if __name__ == "__main__":
    key = jax.random.PRNGKey(0)
    H = 32        # h_feats
    N = 10        # num nodes
    E = 16        # num edges

    k_h, k_src, k_dst, k_w1, k_b1, k_w2, k_b2 = jax.random.split(key, 7)

    h = jax.random.normal(k_h, (N, H), dtype=jnp.float32)
    src = jax.random.randint(k_src, (E,), 0, N)
    dst = jax.random.randint(k_dst, (E,), 0, N)

    # Deterministic parameter init (uniform, matching torch Linear shapes).
    bound1 = 1.0 / jnp.sqrt(2.0 * H)
    w1 = jax.random.uniform(k_w1, (H, 2 * H), minval=-bound1, maxval=bound1,
                            dtype=jnp.float32)
    b1 = jax.random.uniform(k_b1, (H,), minval=-bound1, maxval=bound1,
                            dtype=jnp.float32)
    bound2 = 1.0 / jnp.sqrt(1.0 * H)
    w2 = jax.random.uniform(k_w2, (1, H), minval=-bound2, maxval=bound2,
                            dtype=jnp.float32)
    b2 = jax.random.uniform(k_b2, (1,), minval=-bound2, maxval=bound2,
                            dtype=jnp.float32)

    scores = mlp_predictor_scores(h, src, dst, w1, b1, w2, b2)
    scores = jax.block_until_ready(scores)

    ref = _reference(h, src, dst, w1, b1, w2, b2)
    assert scores.shape == (E,)
    # Tolerance relaxed vs pure-f32 because the per-edge slab is streamed in
    # bf16 (reduction itself is f32 inside the kernel).
    assert jnp.allclose(scores, ref, atol=1e-2, rtol=1e-2)

    print("KERNEL_OK")
</pallas_src>

<mosaic_0001>
module attributes {stable_mosaic.version = 11 : i64} {
  func.func @_edge_score_kernel(%arg0: i32, %arg1: memref<32x128xbf16, #tpu.memory_space<vmem>>, %arg2: memref<32x1xf32, #tpu.memory_space<vmem>>, %arg3: memref<1x128xf32, #tpu.memory_space<vmem>>) attributes {dimension_semantics = [#tpu.dimension_semantics<parallel>], iteration_bounds = array<i64: 1>, scalar_prefetch = 0 : i64, scratch_operands = 0 : i64, tpu.core_type = #tpu.core_type<tc>, window_params = [{transform_indices = @transform_0, window_bounds = array<i64: 32, 128>}, {pipeline_mode = #tpu.pipeline_mode<synchronous>, transform_indices = @transform_1, window_bounds = array<i64: 32, 1>}, {transform_indices = @transform_2, window_bounds = array<i64: 1, 128>}]} {
    %c0 = arith.constant 0 : index
    %c0_0 = arith.constant 0 : index
    %0 = vector.load %arg1[%c0, %c0_0] : memref<32x128xbf16, #tpu.memory_space<vmem>>, vector<32x128xbf16>
    %1 = arith.extf %0 : vector<32x128xbf16> to vector<32x128xf32>
    %cst = arith.constant 0.000000e+00 : f32
    %2 = vector.broadcast %cst : f32 to vector<32x128xf32>
    %3 = arith.maximumf %1, %2 : vector<32x128xf32>
    %c0_1 = arith.constant 0 : index
    %c0_2 = arith.constant 0 : index
    %4 = vector.load %arg2[%c0_1, %c0_2] : memref<32x1xf32, #tpu.memory_space<vmem>>, vector<32x1xf32>
    %5 = vector.broadcast %4 : vector<32x1xf32> to vector<32x128xf32>
    %6 = arith.mulf %3, %5 : vector<32x128xf32>
    %cst_3 = arith.constant dense<0.000000e+00> : vector<128xf32>
    %7 = vector.multi_reduction <add>, %6, %cst_3 [0] : vector<32x128xf32> to vector<128xf32>
    %8 = vector.shape_cast %7 : vector<128xf32> to vector<1x128xf32>
    %c0_4 = arith.constant 0 : index
    %c0_5 = arith.constant 0 : index
    %9 = vector.load %arg3[%c0_4, %c0_5] : memref<1x128xf32, #tpu.memory_space<vmem>>, vector<1x128xf32>
    tpu.vector_store %arg3[%c0_4, %c0_5], %8 {strides = array<i32>} : memref<1x128xf32, #tpu.memory_space<vmem>>, vector<1x128xf32>,
    return
  }
  func.func @transform_0(%arg0: i32) -> (i32, i32) {
    %c0_i32 = arith.constant 0 : i32
    %c0_i32_0 = arith.constant 0 : i32
    return %c0_i32, %arg0 : i32, i32
  }
  func.func @transform_1(%arg0: i32) -> (i32, i32) {
    %c0_i32 = arith.constant 0 : i32
    %c0_i32_0 = arith.constant 0 : i32
    %c0_i32_1 = arith.constant 0 : i32
    return %c0_i32, %c0_i32_0 : i32, i32
  }
  func.func @transform_2(%arg0: i32) -> (i32, i32) {
    %c0_i32 = arith.constant 0 : i32
    %c0_i32_0 = arith.constant 0 : i32
    return %c0_i32, %arg0 : i32, i32
  }
}

</mosaic_0001>

<bundles_post_ra>
// kernel: tpu_custom_call.1
= control target key start
LH: loop header
LB: loop body
LE: loop exit
PB: predicated region body
PF: predicated region fallthrough
CT: control target
= control target key end

     0   :  { %v113_v2 = vmov 0   ;;  %s160_s0 = inlined_call_operand.vmem [shape: bf16[32,128], index: 0, kind: input, shape index: {}]   ;;  %s161_s1 = inlined_call_operand.vmem [shape: f32[32,1], index: 1, kind: input, shape index: {}]   ;;  %s162_s2 = inlined_call_operand.hbm [shape: f32[1,128], index: 2, kind: output, shape index: {}]  }
   0x1   :  { %v26_v0 = vld [vmem:[%s161_s1 + $0x10] sm:$0xff]  ;;  %v24_v1 = vld [vmem:[%s161_s1] sm:$0xff]  ;;  %88 = vset.pattern.permute.xlu1 %v113_v2  ;;  %87 = vset.pattern.permute.xlu0 %v113_v2 }
   0x2   :  { %40 = vperm.xlu1 %88, %v26_v0   ;;  %30 = vperm.xlu0 %87, %v24_v1  }
   0x3   :  { %7 = vsyncpa [#allocation3], 0  ;;  %v27_v3 = vld [vmem:[%s161_s1 + $0x18] sm:$0xff]  ;;  %v25_v4 = vld [vmem:[%s161_s1 + $0x8] sm:$0xff] }
   0x4   :  { %v77_v5 = vld [vmem:[%s160_s0] sm:$0xff]   ;;  %v84_v6 = vld [vmem:[%s160_s0 + $0x8] sm:$0xff]   ;;  %s114_s0 = smov [#allocation2]  }
   0x5   :  { %v78_v7 = vunpack.c.l.bf16 %v77_v5  ;;  %v79_v8 = vunpack.c.h.bf16 %v77_v5  ;;  %v82_v9 = vunpack.c.l.bf16 %v84_v6  ;;  %v83_v13 = vunpack.c.h.bf16 %v84_v6  ;;  %s68_s1 = sshll.u32 %s114_s0, 4  ;;  %s69_s1 = int_to_ptr.vmem [resolvable:$true] %s68_s1 }
   0x6   :  { %45 = vperm.xlu1 %88, %v27_v3   ;;  %35 = vperm.xlu0 %87, %v25_v4   ;;  %s89_s21 = scalar_lea.vmem %s69_s1, 16  ;;  %s93_s22 = scalar_lea.vmem %s69_s1, 32 }
   0x7   :  { %v20_v12 = vmax.f32 %v78_v7, 0.0  ;;  %v21_v14 = vmax.f32 %v79_v8, 0.0  ;;  %v22_v15 = vmax.f32 %v82_v9, 0.0  ;;  %v23_v18 = vmax.f32 %v83_v13, 0.0  ;;  %p90_p0 = scmp.ne.s32.totalorder %s69_s1, %s89_s21  ;;  %p94_p1 = scmp.lt.s32.totalorder %s69_s1, %s69_s1 }
   0x8   :  { %p95_p2 = scmp.lt.s32.totalorder %s93_s22, %s89_s21 }
   0xa   :  { %p96_p3 = por %p95_p2, %p94_p1 }
   0xc   :  { %p97_p4 = pnand %p96_p3, %p90_p0 }
  0x81   :  { %v41_v10 = vpop.permute.xlu1 %40  ;;  %v31_v11 = vpop.permute.xlu0 %30 }
  0x82   :  { %v48_v17 = vmul.f32 %v31_v11, %v20_v12  ;;  %v50_v21 = vmul.f32 %v41_v10, %v22_v15 }
  0x85   :  { %v36_v16 = vpop.permute.xlu0 %35  ;;  %v46_v20 = vpop.permute.xlu1 %45 }
  0x86   :  { %v49_v19 = vmul.f32 %v36_v16, %v21_v14  ;;  %v51_v23 = vmul.f32 %v46_v20, %v23_v18 }
  0x88   :  { %v52_v22 = vadd.f32 %v49_v19, %v48_v17 }
  0x8a   :  { %v53_v24 = vadd.f32 %v52_v22, %v50_v21 }
  0x8c   :  { %v54_v25 = vadd.f32 %v53_v24, %v51_v23 }
  0x8e   :  { %v55_v26 = vrot.slane %v54_v25, 4 }
  0x90   :  { %v56_v27 = vadd.f32 %v55_v26, %v54_v25 }
  0x92   :  { %v57_v28 = vrot.slane %v56_v27, 2 }
  0x94   :  { %v58_v29 = vadd.f32 %v57_v28, %v56_v27 }
  0x96   :  { %v59_v30 = vrot.slane %v58_v29, 1 }
  0x98   :  { %v60_v31 = vadd.f32 %v59_v30, %v58_v29 }
  0x9a   :  { %61 = vst [vmem:[#allocation2] sm:$0x1] %v60_v31 }
  0x9b   :  { %100 = shalt.err (!%p97_p4)
}
  0x9c   :  { %s101_s25 = scalar_lea.hbm %s162_s2, 16 }
  0x9d   :  { %p102_p5 = scmp.ne.s32.totalorder %s162_s2, %s101_s25  ;;  %p105_p6 = scmp.lt.u32.totalorder %s101_s25, %s162_s2 }
  0x9f   :  { %p107_p7 = pnand %p105_p6, %p102_p5 }
  0xa1   :  { %110 = shalt.err (!%p107_p7)
}
  0xa2   :  { %71 = dma.vmem_to_hbm [thread:$0]  %s69_s1, 16, %s162_s2, [#allocation3]  }
  0xa3   :  { %111 = dma.done.wait [#allocation3], 16  }
  0xa4   :  { %112 = vsyncadd [#allocation3], 4294967280 }
  0xa5   :  { %75 = vsyncpa [#allocation3], 1 }

</bundles_post_ra>
